<compile_context>
chip_gen: v7x
topology: tpu7x:2x2x1
jax: 0.10.0
libtpu: 0.0.40
codegen_flags: <defaults>
</compile_context>

<pallas_src>
import functools

import jax
import jax.numpy as jnp
from jax.experimental import pallas as pl
from jax.experimental.pallas import tpu as pltpu


def _round_up(x, m):
    return (x + m - 1) // m * m


# ----------------------------------------------------------------------------
# Fused backbone kernel: stem -> pw1 -> pw2 -> masked GAP accumulate -> (finalize) head
# ----------------------------------------------------------------------------
def _fused_backbone_kernel(x_ref, sw_ref, sb_ref, w1_ref, b1_ref, w2_ref, b2_ref,
                           fw_ref, fb_ref, o_ref, acc_ref, *, hw_valid, tile_s, inv_hw):
    i = pl.program_id(1)  # row-tile (reduction) axis, innermost

    @pl.when(i == 0)
    def _():
        acc_ref[...] = jnp.zeros_like(acc_ref)

    # Stem 3x3/s2 conv as matmul over im2col patches (K zero-padded to 32); BN folded
    # into the bias; SiLU on the f32 accumulator (v5e-safe), then downcast for the MXU.
    h = jnp.dot(x_ref[...], sw_ref[...], preferred_element_type=jnp.float32)
    h = h + sb_ref[...]
    h = h * jax.nn.sigmoid(h)

    # Pointwise block 1 (1x1 conv == matmul).
    h = jnp.dot(h.astype(jnp.bfloat16), w1_ref[...], preferred_element_type=jnp.float32)
    h = h + b1_ref[...]
    h = h * jax.nn.sigmoid(h)

    # Pointwise block 2.
    h = jnp.dot(h.astype(jnp.bfloat16), w2_ref[...], preferred_element_type=jnp.float32)
    h = h + b2_ref[...]
    h = h * jax.nn.sigmoid(h)

    # Fused global-average-pool: mask rows past the true spatial extent, accumulate partial sum.
    row = jax.lax.broadcasted_iota(jnp.int32, (tile_s, 1), 0) + i * tile_s
    h = jnp.where(row < hw_valid, h, 0.0)
    acc_ref[...] += jnp.sum(h, axis=0, keepdims=True)

    # Finalize: GAP normalize + fused dual head (lane-dense 128-wide padded output).
    @pl.when(i == pl.num_programs(1) - 1)
    def _():
        feat = acc_ref[...] * inv_hw                              # [1, 128] f32
        out = jnp.dot(feat.astype(jnp.bfloat16), fw_ref[...],
                      preferred_element_type=jnp.float32) + fb_ref[...]
        o_ref[...] = out[None].astype(o_ref.dtype)                # [1, 1, 128]


# ----------------------------------------------------------------------------
# Glue: im2col for the 3x3 stride-2 "same"-padded stem conv (plain-JAX; see TODO above)
# ----------------------------------------------------------------------------
def im2col_3x3_s2(x_nhwc):
    """[B,H,W,C] -> [B, H//2, W//2, 9*C] patches (TF-style 'same' padding)."""
    B, H, W, C = x_nhwc.shape
    Ho, Wo = H // 2, W // 2
    xp = jnp.pad(x_nhwc, ((0, 0), (0, 1), (0, 1), (0, 0)))
    cols = []
    for dy in range(3):
        for dx in range(3):
            cols.append(xp[:, dy:dy + 2 * Ho:2, dx:dx + 2 * Wo:2, :])
    return jnp.concatenate(cols, axis=-1)  # [B, Ho, Wo, 9*C]


# ----------------------------------------------------------------------------
# Parameter init (deterministic, synthetic; BN folded into biases; bf16 weights)
# ----------------------------------------------------------------------------
def init_params(key, num_classes=2, head_pad=128):
    ks = jax.random.split(key, 8)

    def dense(k, fan_in, fan_out):
        scale = 1.0 / jnp.sqrt(jnp.float32(fan_in))
        return jax.random.normal(k, (fan_in, fan_out), jnp.float32) * scale

    def bias(k, n):
        return jax.random.normal(k, (1, n), jnp.float32) * 0.01

    n_out = num_classes + 1  # 2 class logits + 1 score head (num_classes=[2, 1])

    stem_w = dense(ks[0], 9 * 3, 32)                         # 3x3 conv, 3 -> 32 channels
    stem_w = jnp.pad(stem_w, ((0, 32 - 27), (0, 0)))         # K: 27 -> 32 (sublane aligned)
    fc_w = dense(ks[6], 128, n_out)
    fc_w = jnp.pad(fc_w, ((0, 0), (0, head_pad - n_out)))    # N: 3 -> 128 (lane-dense store)
    fc_b = jnp.pad(bias(ks[7], n_out), ((0, 0), (0, head_pad - n_out)))

    return {
        "stem_w": stem_w.astype(jnp.bfloat16),
        "stem_b": bias(ks[1], 32),
        "pw1_w": dense(ks[2], 32, 64).astype(jnp.bfloat16),  # pointwise 1x1, 32 -> 64
        "pw1_b": bias(ks[3], 64),
        "pw2_w": dense(ks[4], 64, 128).astype(jnp.bfloat16),  # pointwise 1x1, 64 -> 128
        "pw2_b": bias(ks[5], 128),
        "fc_w": fc_w.astype(jnp.bfloat16),                   # fused dual head (padded)
        "fc_b": fc_b,
    }


# ----------------------------------------------------------------------------
# Detector.forward equivalent
# ----------------------------------------------------------------------------
def detector_forward(params, img_nchw, num_classes=2):
    # NCHW (PyTorch convention) -> NHWC for lane-dense channel compute.
    x = jnp.transpose(img_nchw, (0, 2, 3, 1)).astype(jnp.float32)
    B = x.shape[0]

    patches = im2col_3x3_s2(x)                       # [B, Ho, Wo, 27]
    Ho, Wo = patches.shape[1], patches.shape[2]
    HWo = Ho * Wo
    Kp = params["stem_w"].shape[0]                   # 32 (zero-padded contraction dim)
    n_head = params["fc_w"].shape[1]                 # 128 (lane-dense padded head width)

    # Row tile: up to 512 flattened spatial rows per grid step.  bf16 double-buffered
    # input tiles + resident weights stay far below the 16 MiB v5e scoped default and
    # the 64 MiB v7x physical VMEM.
    tile = max(16, min(512, _round_up(HWo, 16)))
    nt = pl.cdiv(HWo, tile)
    s_pad = nt * tile

    patches = patches.reshape(B, HWo, patches.shape[-1])
    patches = jnp.pad(patches, ((0, 0), (0, s_pad - HWo), (0, Kp - patches.shape[-1])))
    patches2d = patches.reshape(B * s_pad, Kp).astype(jnp.bfloat16)

    def full_spec(arr):
        return pl.BlockSpec(arr.shape, lambda b, i, _nd=arr.ndim: (0,) * _nd)

    kernel = functools.partial(_fused_backbone_kernel,
                               hw_valid=HWo, tile_s=tile, inv_hw=1.0 / HWo)

    flops = 2 * B * s_pad * (Kp * 32 + 32 * 64 + 64 * 128) + 2 * B * 128 * n_head
    transcendentals = B * s_pad * (32 + 64 + 128) + B * n_head
    bytes_accessed = (patches2d.size * 2
                      + sum(int(p.size) * p.dtype.itemsize for p in params.values())
                      + B * n_head * 4)

    out = pl.pallas_call(
        kernel,
        out_shape=jax.ShapeDtypeStruct((B, 1, n_head), jnp.float32),
        grid_spec=pltpu.PrefetchScalarGridSpec(
            num_scalar_prefetch=0,
            grid=(B, nt),                                      # reduction (row-tile) axis last
            in_specs=[
                pl.BlockSpec((tile, Kp), lambda b, i: (b * nt + i, 0)),
                full_spec(params["stem_w"]), full_spec(params["stem_b"]),
                full_spec(params["pw1_w"]), full_spec(params["pw1_b"]),
                full_spec(params["pw2_w"]), full_spec(params["pw2_b"]),
                full_spec(params["fc_w"]), full_spec(params["fc_b"]),
            ],
            out_specs=pl.BlockSpec((1, 1, n_head), lambda b, i: (b, 0, 0)),
            scratch_shapes=[pltpu.VMEM((1, n_head), jnp.float32)],  # GAP accumulator
        ),
        compiler_params=pltpu.CompilerParams(
            dimension_semantics=("parallel", "arbitrary"),
            vmem_limit_bytes=32 * 1024 * 1024,
        ),
        cost_estimate=pl.CostEstimate(flops=int(flops),
                                      transcendentals=int(transcendentals),
                                      bytes_accessed=int(bytes_accessed)),
    )(patches2d,
      params["stem_w"], params["stem_b"],
      params["pw1_w"], params["pw1_b"],
      params["pw2_w"], params["pw2_b"],
      params["fc_w"], params["fc_b"])

    feats = out.reshape(B, n_head)
    # Dual head: EfficientNet(num_classes=[2, 1]) returns a tuple -> (logits, score).
    logits = feats[:, :num_classes]                  # [B, 2]
    score = feats[:, num_classes:num_classes + 1]    # [B, 1]
    return logits, score


if __name__ == "__main__":
    key = jax.random.PRNGKey(0)
    k_img, k_params = jax.random.split(key)

    img = jax.random.normal(k_img, (2, 3, 16, 16), dtype=jnp.float32)  # NCHW
    params = init_params(k_params, num_classes=2)

    logits, score = detector_forward(params, img, num_classes=2)
    jax.block_until_ready((logits, score))

    assert logits.shape == (2, 2), logits.shape
    assert score.shape == (2, 1), score.shape
    assert jnp.all(jnp.isfinite(logits)) and jnp.all(jnp.isfinite(score))
    print("KERNEL_OK")
</pallas_src>

<mosaic_0001>
module attributes {stable_mosaic.version = 11 : i64} {
  func.func @_fused_backbone_kernel(%arg0: i32, %arg1: i32, %arg2: memref<64x32xbf16, #tpu.memory_space<vmem>>, %arg3: memref<32x32xbf16, #tpu.memory_space<vmem>>, %arg4: memref<1x32xf32, #tpu.memory_space<vmem>>, %arg5: memref<32x64xbf16, #tpu.memory_space<vmem>>, %arg6: memref<1x64xf32, #tpu.memory_space<vmem>>, %arg7: memref<64x128xbf16, #tpu.memory_space<vmem>>, %arg8: memref<1x128xf32, #tpu.memory_space<vmem>>, %arg9: memref<128x128xbf16, #tpu.memory_space<vmem>>, %arg10: memref<1x128xf32, #tpu.memory_space<vmem>>, %arg11: memref<1x1x128xf32, #tpu.memory_space<vmem>>, %arg12: memref<1x128xf32, #tpu.memory_space<vmem>>) attributes {dimension_semantics = [#tpu.dimension_semantics<parallel>, #tpu.dimension_semantics<arbitrary>], iteration_bounds = array<i64: 2, 1>, scalar_prefetch = 0 : i64, scratch_operands = 1 : i64, tpu.core_type = #tpu.core_type<tc>, window_params = [{transform_indices = @transform_0, window_bounds = array<i64: 64, 32>}, {pipeline_mode = #tpu.pipeline_mode<synchronous>, transform_indices = @transform_1, window_bounds = array<i64: 32, 32>}, {pipeline_mode = #tpu.pipeline_mode<synchronous>, transform_indices = @transform_2, window_bounds = array<i64: 1, 32>}, {pipeline_mode = #tpu.pipeline_mode<synchronous>, transform_indices = @transform_3, window_bounds = array<i64: 32, 64>}, {pipeline_mode = #tpu.pipeline_mode<synchronous>, transform_indices = @transform_4, window_bounds = array<i64: 1, 64>}, {pipeline_mode = #tpu.pipeline_mode<synchronous>, transform_indices = @transform_5, window_bounds = array<i64: 64, 128>}, {pipeline_mode = #tpu.pipeline_mode<synchronous>, transform_indices = @transform_6, window_bounds = array<i64: 1, 128>}, {pipeline_mode = #tpu.pipeline_mode<synchronous>, transform_indices = @transform_7, window_bounds = array<i64: 128, 128>}, {pipeline_mode = #tpu.pipeline_mode<synchronous>, transform_indices = @transform_8, window_bounds = array<i64: 1, 128>}, {transform_indices = @transform_9, window_bounds = array<i64: 1, 1, 128>}]} {
    %c0_i32 = arith.constant 0 : i32
    %0 = arith.cmpi eq, %arg1, %c0_i32 : i32
    %1 = arith.extui %0 : i1 to i32
    %c0_i32_0 = arith.constant 0 : i32
    %2 = arith.cmpi ne, %1, %c0_i32_0 : i32
    scf.if %2 {
      %cst_28 = arith.constant 0.000000e+00 : f32
      %57 = vector.broadcast %cst_28 : f32 to vector<1x128xf32>
      %c0_29 = arith.constant 0 : index
      %c0_30 = arith.constant 0 : index
      %58 = vector.load %arg12[%c0_29, %c0_30] : memref<1x128xf32, #tpu.memory_space<vmem>>, vector<1x128xf32>
      tpu.vector_store %arg12[%c0_29, %c0_30], %57 {strides = array<i32>} : memref<1x128xf32, #tpu.memory_space<vmem>>, vector<1x128xf32>,
    } else {
    }
    %c0 = arith.constant 0 : index
    %c0_1 = arith.constant 0 : index
    %3 = vector.load %arg2[%c0, %c0_1] : memref<64x32xbf16, #tpu.memory_space<vmem>>, vector<64x32xbf16>
    %c0_2 = arith.constant 0 : index
    %c0_3 = arith.constant 0 : index
    %4 = vector.load %arg3[%c0_2, %c0_3] : memref<32x32xbf16, #tpu.memory_space<vmem>>, vector<32x32xbf16>
    %cst = arith.constant dense<0.000000e+00> : vector<64x32xf32>
    %5 = tpu.matmul %3, %4, %cst {dimension_numbers = #tpu.dot_dimension_numbers<[1], [0], [0], [1], [0, 0, 1, 1], [], []>} : vector<64x32xbf16>, vector<32x32xbf16>, vector<64x32xf32> -> vector<64x32xf32>
    %c0_4 = arith.constant 0 : index
    %c0_5 = arith.constant 0 : index
    %6 = vector.load %arg4[%c0_4, %c0_5] : memref<1x32xf32, #tpu.memory_space<vmem>>, vector<1x32xf32>
    %7 = vector.broadcast %6 : vector<1x32xf32> to vector<64x32xf32>
    %8 = arith.addf %5, %7 : vector<64x32xf32>
    %9 = arith.negf %8 : vector<64x32xf32>
    %10 = math.exp %9 : vector<64x32xf32>
    %cst_6 = arith.constant 1.000000e+00 : f32
    %11 = vector.broadcast %cst_6 : f32 to vector<64x32xf32>
    %12 = arith.addf %11, %10 : vector<64x32xf32>
    %13 = arith.divf %11, %12 : vector<64x32xf32>
    %14 = arith.mulf %8, %13 : vector<64x32xf32>
    %15 = arith.truncf %14 : vector<64x32xf32> to vector<64x32xbf16>
    %c0_7 = arith.constant 0 : index
    %c0_8 = arith.constant 0 : index
    %16 = vector.load %arg5[%c0_7, %c0_8] : memref<32x64xbf16, #tpu.memory_space<vmem>>, vector<32x64xbf16>
    %cst_9 = arith.constant dense<0.000000e+00> : vector<64x64xf32>
    %17 = tpu.matmul %15, %16, %cst_9 {dimension_numbers = #tpu.dot_dimension_numbers<[1], [0], [0], [1], [0, 0, 1, 1], [], []>} : vector<64x32xbf16>, vector<32x64xbf16>, vector<64x64xf32> -> vector<64x64xf32>
    %c0_10 = arith.constant 0 : index
    %c0_11 = arith.constant 0 : index
    %18 = vector.load %arg6[%c0_10, %c0_11] : memref<1x64xf32, #tpu.memory_space<vmem>>, vector<1x64xf32>
    %19 = vector.broadcast %18 : vector<1x64xf32> to vector<64x64xf32>
    %20 = arith.addf %17, %19 : vector<64x64xf32>
    %21 = arith.negf %20 : vector<64x64xf32>
    %22 = math.exp %21 : vector<64x64xf32>
    %cst_12 = arith.constant 1.000000e+00 : f32
    %23 = vector.broadcast %cst_12 : f32 to vector<64x64xf32>
    %24 = arith.addf %23, %22 : vector<64x64xf32>
    %25 = arith.divf %23, %24 : vector<64x64xf32>
    %26 = arith.mulf %20, %25 : vector<64x64xf32>
    %27 = arith.truncf %26 : vector<64x64xf32> to vector<64x64xbf16>
    %c0_13 = arith.constant 0 : index
    %c0_14 = arith.constant 0 : index
    %28 = vector.load %arg7[%c0_13, %c0_14] : memref<64x128xbf16, #tpu.memory_space<vmem>>, vector<64x128xbf16>
    %cst_15 = arith.constant dense<0.000000e+00> : vector<64x128xf32>
    %29 = tpu.matmul %27, %28, %cst_15 {dimension_numbers = #tpu.dot_dimension_numbers<[1], [0], [0], [1], [0, 0, 1, 1], [], []>} : vector<64x64xbf16>, vector<64x128xbf16>, vector<64x128xf32> -> vector<64x128xf32>
    %c0_16 = arith.constant 0 : index
    %c0_17 = arith.constant 0 : index
    %30 = vector.load %arg8[%c0_16, %c0_17] : memref<1x128xf32, #tpu.memory_space<vmem>>, vector<1x128xf32>
    %31 = vector.broadcast %30 : vector<1x128xf32> to vector<64x128xf32>
    %32 = arith.addf %29, %31 : vector<64x128xf32>
    %33 = arith.negf %32 : vector<64x128xf32>
    %34 = math.exp %33 : vector<64x128xf32>
    %cst_18 = arith.constant 1.000000e+00 : f32
    %35 = vector.broadcast %cst_18 : f32 to vector<64x128xf32>
    %36 = arith.addf %35, %34 : vector<64x128xf32>
    %37 = arith.divf %35, %36 : vector<64x128xf32>
    %38 = arith.mulf %32, %37 : vector<64x128xf32>
    %39 = tpu.iota {dimensions = array<i32: 0>} : vector<64x1xi32>
    %c64_i32 = arith.constant 64 : i32
    %40 = arith.muli %arg1, %c64_i32 : i32
    %41 = vector.broadcast %40 : i32 to vector<64x1xi32>
    %42 = arith.addi %39, %41 : vector<64x1xi32>
    %c64_i32_19 = arith.constant 64 : i32
    %43 = vector.broadcast %c64_i32_19 : i32 to vector<64x1xi32>
    %44 = arith.cmpi slt, %42, %43 : vector<64x1xi32>
    %cst_20 = arith.constant 0.000000e+00 : f32
    %45 = vector.shape_cast %44 : vector<64x1xi1> to vector<64x1xi1>
    %46 = vector.broadcast %45 : vector<64x1xi1> to vector<64x128xi1>
    %47 = vector.broadcast %cst_20 : f32 to vector<64x128xf32>
    %48 = arith.select %46, %38, %47 : vector<64x128xi1>, vector<64x128xf32>
    %c0_21 = arith.constant 0 : index
    %c0_22 = arith.constant 0 : index
    %49 = vector.load %arg12[%c0_21, %c0_22] : memref<1x128xf32, #tpu.memory_space<vmem>>, vector<1x128xf32>
    %cst_23 = arith.constant dense<0.000000e+00> : vector<128xf32>
    %50 = vector.multi_reduction <add>, %48, %cst_23 [0] : vector<64x128xf32> to vector<128xf32>
    %51 = vector.shape_cast %50 : vector<128xf32> to vector<1x128xf32>
    %52 = arith.addf %49, %51 : vector<1x128xf32>
    %c0_24 = arith.constant 0 : index
    %c0_25 = arith.constant 0 : index
    %53 = vector.load %arg12[%c0_24, %c0_25] : memref<1x128xf32, #tpu.memory_space<vmem>>, vector<1x128xf32>
    tpu.vector_store %arg12[%c0_24, %c0_25], %52 {strides = array<i32>} : memref<1x128xf32, #tpu.memory_space<vmem>>, vector<1x128xf32>,
    %c0_i32_26 = arith.constant 0 : i32
    %54 = arith.cmpi eq, %arg1, %c0_i32_26 : i32
    %55 = arith.extui %54 : i1 to i32
    %c0_i32_27 = arith.constant 0 : i32
    %56 = arith.cmpi ne, %55, %c0_i32_27 : i32
    scf.if %56 {
      %c0_28 = arith.constant 0 : index
      %c0_29 = arith.constant 0 : index
      %57 = vector.load %arg12[%c0_28, %c0_29] : memref<1x128xf32, #tpu.memory_space<vmem>>, vector<1x128xf32>
      %cst_30 = arith.constant 1.562500e-02 : f32
      %58 = vector.broadcast %cst_30 : f32 to vector<1x128xf32>
      %59 = arith.mulf %57, %58 : vector<1x128xf32>
      %60 = arith.truncf %59 : vector<1x128xf32> to vector<1x128xbf16>
      %c0_31 = arith.constant 0 : index
      %c0_32 = arith.constant 0 : index
      %61 = vector.load %arg9[%c0_31, %c0_32] : memref<128x128xbf16, #tpu.memory_space<vmem>>, vector<128x128xbf16>
      %cst_33 = arith.constant dense<0.000000e+00> : vector<1x128xf32>
      %62 = tpu.matmul %60, %61, %cst_33 {dimension_numbers = #tpu.dot_dimension_numbers<[1], [0], [0], [1], [0, 0, 1, 1], [], []>} : vector<1x128xbf16>, vector<128x128xbf16>, vector<1x128xf32> -> vector<1x128xf32>
      %c0_34 = arith.constant 0 : index
      %c0_35 = arith.constant 0 : index
      %63 = vector.load %arg10[%c0_34, %c0_35] : memref<1x128xf32, #tpu.memory_space<vmem>>, vector<1x128xf32>
      %64 = arith.addf %62, %63 : vector<1x128xf32>
      %65 = vector.shape_cast %64 : vector<1x128xf32> to vector<1x1x128xf32>
      %c0_36 = arith.constant 0 : index
      %c0_37 = arith.constant 0 : index
      %c0_38 = arith.constant 0 : index
      %66 = vector.load %arg11[%c0_36, %c0_37, %c0_38] : memref<1x1x128xf32, #tpu.memory_space<vmem>>, vector<1x1x128xf32>
      tpu.vector_store %arg11[%c0_36, %c0_37, %c0_38], %65 {strides = array<i32>} : memref<1x1x128xf32, #tpu.memory_space<vmem>>, vector<1x1x128xf32>,
    } else {
    }
    return
  }
  func.func @transform_0(%arg0: i32, %arg1: i32) -> (i32, i32) {
    %c1_i32 = arith.constant 1 : i32
    %0 = arith.muli %arg0, %c1_i32 : i32
    %1 = arith.addi %0, %arg1 : i32
    %c0_i32 = arith.constant 0 : i32
    %c0_i32_0 = arith.constant 0 : i32
    return %1, %c0_i32 : i32, i32
  }
  func.func @transform_1(%arg0: i32, %arg1: i32) -> (i32, i32) {
    %c0_i32 = arith.constant 0 : i32
    %c0_i32_0 = arith.constant 0 : i32
    %c0_i32_1 = arith.constant 0 : i32
    return %c0_i32, %c0_i32_0 : i32, i32
  }
  func.func @transform_2(%arg0: i32, %arg1: i32) -> (i32, i32) {
    %c0_i32 = arith.constant 0 : i32
    %c0_i32_0 = arith.constant 0 : i32
    %c0_i32_1 = arith.constant 0 : i32
    return %c0_i32, %c0_i32_0 : i32, i32
  }
  func.func @transform_3(%arg0: i32, %arg1: i32) -> (i32, i32) {
    %c0_i32 = arith.constant 0 : i32
    %c0_i32_0 = arith.constant 0 : i32
    %c0_i32_1 = arith.constant 0 : i32
    return %c0_i32, %c0_i32_0 : i32, i32
  }
  func.func @transform_4(%arg0: i32, %arg1: i32) -> (i32, i32) {
    %c0_i32 = arith.constant 0 : i32
    %c0_i32_0 = arith.constant 0 : i32
    %c0_i32_1 = arith.constant 0 : i32
    return %c0_i32, %c0_i32_0 : i32, i32
  }
  func.func @transform_5(%arg0: i32, %arg1: i32) -> (i32, i32) {
    %c0_i32 = arith.constant 0 : i32
    %c0_i32_0 = arith.constant 0 : i32
    %c0_i32_1 = arith.constant 0 : i32
    return %c0_i32, %c0_i32_0 : i32, i32
  }
  func.func @transform_6(%arg0: i32, %arg1: i32) -> (i32, i32) {
    %c0_i32 = arith.constant 0 : i32
    %c0_i32_0 = arith.constant 0 : i32
    %c0_i32_1 = arith.constant 0 : i32
    return %c0_i32, %c0_i32_0 : i32, i32
  }
  func.func @transform_7(%arg0: i32, %arg1: i32) -> (i32, i32) {
    %c0_i32 = arith.constant 0 : i32
    %c0_i32_0 = arith.constant 0 : i32
    %c0_i32_1 = arith.constant 0 : i32
    return %c0_i32, %c0_i32_0 : i32, i32
  }
  func.func @transform_8(%arg0: i32, %arg1: i32) -> (i32, i32) {
    %c0_i32 = arith.constant 0 : i32
    %c0_i32_0 = arith.constant 0 : i32
    %c0_i32_1 = arith.constant 0 : i32
    return %c0_i32, %c0_i32_0 : i32, i32
  }
  func.func @transform_9(%arg0: i32, %arg1: i32) -> (i32, i32, i32) {
    %c0_i32 = arith.constant 0 : i32
    %c0_i32_0 = arith.constant 0 : i32
    %c0_i32_1 = arith.constant 0 : i32
    return %arg0, %c0_i32, %c0_i32_0 : i32, i32, i32
  }
}

</mosaic_0001>

<bundles_post_ra>
// kernel: tpu_custom_call.1
= control target key start
LH: loop header
LB: loop body
LE: loop exit
PB: predicated region body
PF: predicated region fallthrough
CT: control target
= control target key end

     0   :  { %14 = vsyncpa [#allocation4], 0  ;;  %s1987_s0 = inlined_call_operand.vmem [shape: bf16[128,32], index: 0, kind: input, shape index: {}]   ;;  %s1988_s1 = inlined_call_operand.hbm [shape: bf16[32,32], index: 1, kind: input, shape index: {}]   ;;  %s1989_s2 = inlined_call_operand.vmem [shape: f32[1,32], index: 2, kind: input, shape index: {}]   ;;  %s1990_s3 = inlined_call_operand.hbm [shape: bf16[32,64], index: 3, kind: input, shape index: {}]   ;;  %s1991_s4 = inlined_call_operand.vmem [shape: f32[1,64], index: 4, kind: input, shape index: {}]   ;;  %s1992_s5 = inlined_call_operand.vmem [shape: bf16[64,128], index: 5, kind: input, shape index: {}]   ;;  %s1993_s6 = inlined_call_operand.vmem [shape: f32[1,128], index: 6, kind: input, shape index: {}]   ;;  %s1994_s7 = inlined_call_operand.vmem [shape: bf16[128,128], index: 7, kind: input, shape index: {}]   ;;  %s1995_s8 = inlined_call_operand.vmem [shape: f32[1,128], index: 8, kind: input, shape index: {}]   ;;  %s1996_s9 = inlined_call_operand.hbm [shape: f32[2,1,128], index: 9, kind: output, shape index: {}]  }
   0x1   :  { %15 = vsyncpa [#allocation7], 0 }
   0x2   :  { %16 = vsyncpa [#allocation5], 0 }
   0x3   :  { %18 = vsyncpa [#allocation5 + $0x1], 0  ;;  %s1745_s30 = smov 0   ;;  %s1747_s10 = smov 0  }
   0x4   :  { %s1749_s11 = smov 0   ;;  %s1751_s12 = smov 0  }
   0x5   :  { %s1753_s13 = smov 0   ;;  %s1755_s14 = smov 0  }
   0x6 LB: > { %2005 = sst [smem:[#allocation12_spill]] %s1674_s11  ;;  %s1186_s15 = sadd.s32 4294967295, %s1686_s14   ;;  %s1686_s14 = sphi %s1755_s14, %s24_s14   ;;  %s1682_s13 = sphi %s1753_s13, %s2023_s13   ;;  %s1678_s12 = sphi %s1751_s12, %s2022_s12   ;;  %s1674_s11 = sphi %s1749_s11, %s2021_s11   ;;  %s1670_s10 = sphi %s1747_s10, %s2025_s10   ;;  %s1666_s30 = sphi %s1745_s30, %s2024_s30  }
   0x7   : > { %2006 = sst [smem:[#allocation13_spill]] %s1682_s13  ;;  %s1187_s16 = sadd.s32 4294967294, %s1686_s14  }
   0x8   : > { %s36_s17 = sadd.s32 1, %s1682_s13  ;;  %s239_s18 = sadd.s32 1, %s1674_s11 }
   0x9   : > { %p38_p0 = scmp.ge.s32.totalorder %s36_s17, 2  ;;  %p249_p1 = scmp.ne.s32.totalorder %s1674_s11, %s1670_s10 }
   0xa   : > { %p250_p2 = scmp.eq.s32.totalorder %s1186_s15, 1  ;;  %p255_p3 = scmp.ne.s32.totalorder %s1670_s10, %s1666_s30 }
   0xb   : > { %s2027_s17 = smov (%p38_p0, %s36_s17), 0  ;;  %p256_p5 = scmp.eq.s32.totalorder %s1187_s16, 1 }
   0xc   : > { %2007 = sst [smem:[#allocation14_spill]] %s2027_s17  ;;  %p1785_p4 = por %p250_p2, %p249_p1 }
   0xd   : > { %s236_s20 = ssub.s32 %s1682_s13, %s2027_s17  ;;  %p1188_p6 = scmp.ge.s32.totalorder %s1686_s14, 1 }
   0xe   : > { %s2008_s19 = scalar_select %p1785_p4, 1, 0 }
   0xf   : > { %p237_p7 = scmp.eq.s32.totalorder %s236_s20, 0  ;;  %p1792_p8 = por %p256_p5, %p255_p3 }
  0x10   : > { %p263_p9 = scmp.lt.s32.totalorder %s1686_s14, 3  ;;  %p1804_p11 = scmp.eq.s32.totalorder %s1186_s15, 0 }
  0x11   : > { %s2009_s21 = scalar_select %p1792_p8, 1, 0 }
  0x12   : > { %s1798_s22 = scalar_select %p237_p7, %s1674_s11, %s239_s18  }
  0x13   : > { %2010 = sst [smem:[#allocation15_spill]] %s2009_s21  ;;  %p1800_p10 = pnand %p1188_p6, %p263_p9 }
  0x14   : > { %2011 = sst [smem:[#allocation16_spill]] %s1798_s22  ;;  %s1688_s25 = smov [#allocation3]  }
  0x15   : > { %s2012_s23 = scalar_select %p1800_p10, 1, 0 }
  0x16   : > { %s2013_s24 = scalar_select %p1804_p11, 1, 0 }
  0x17   : > { %p1358_p12 = pneg %p1800_p10  ;;  %s275_s26 = sshll.u32 %s1688_s25, 4  ;;  %s276_s26 = int_to_ptr.vmem [resolvable:$true] %s275_s26 }
  0x18   : > { %s1689_s28 = smov [#allocation6]   ;;  %s1544_s18 = scalar_lea.hbm %s1988_s1, 256 }
  0x19   : > { %p1812_p13 = pnand %p1804_p11, %p1358_p12  ;;  %s291_s29 = sshll.u32 %s1689_s28, 4  ;;  %s1816_s29 = int_to_ptr.vmem [resolvable:$true] %s291_s29 }
  0x1a   : > { %p1545_p0 = scmp.ne.s32.totalorder %s1988_s1, %s1544_s18  ;;  %p1551_p5 = scmp.lt.u32.totalorder %s1544_s18, %s1988_s1 }
  0x1b   : > { %p1546_p1 = pneg %p1812_p13 }
  0x1d   : > { %p1547_p2 = pnand %p1546_p1, %p1545_p0 }
  0x1f   : > { %p1548_p3 = pneg %p1547_p2 }
  0x21   : > { %p1553_p6 = pnand %p1551_p5, %p1548_p3 }
  0x23   : > { %1556 = shalt.err (!%p1553_p6)
}
  0x24   : > { %s1557_s28 = scalar_lea.vmem %s276_s26, 256  ;;  %p1565_p8 = scmp.lt.s32.totalorder %s276_s26, %s276_s26 }
  0x25   : > { %p1558_p7 = scmp.ne.s32.totalorder %s276_s26, %s1557_s28  ;;  %p1566_p4 = scmp.lt.s32.totalorder %s1557_s28, %s1557_s28 }
  0x27   : > { %p1560_p9 = pnand %p1558_p7, %p1546_p1  ;;  %p1567_p11 = por %p1566_p4, %p1565_p8 }
  0x29   : > { %p1561_p12 = pneg %p1560_p9 }
  0x2b   : > { %p1568_p10 = pnand %p1567_p11, %p1561_p12 }
  0x2d   : > { %1571 = shalt.err (!%p1568_p10)
}
  0x2e   : > { %s1690_s17 = smov 64   ;;  %s1691_s15 = smov 4  }
  0x2f   : > { %1361 = dma.hbm_to_vmem [thread:$0]  (!%p1812_p13), %s1988_s1, 256, %s276_s26, [#allocation4], %s1690_s17, %s1690_s17, %s1691_s15  }
  0x30   : > { %s1572_s25 = scalar_lea.hbm %s1990_s3, 256 }
  0x31   : > { %p1573_p0 = scmp.ne.s32.totalorder %s1990_s3, %s1572_s25  ;;  %p1579_p10 = scmp.lt.u32.totalorder %s1572_s25, %s1990_s3 }
  0x33   : > { %p1575_p4 = pnand %p1573_p0, %p1546_p1 }
  0x35   : > { %p1576_p8 = pneg %p1575_p4 }
  0x37   : > { %p1581_p11 = pnand %p1579_p10, %p1576_p8 }
  0x39   : > { %1584 = shalt.err (!%p1581_p11)
}
  0x3a   : > { %s1585_s26 = scalar_lea.vmem %s1816_s29, 256  ;;  %p1593_p6 = scmp.lt.s32.totalorder %s1816_s29, %s1816_s29 }
  0x3b   : > { %p1586_p2 = scmp.ne.s32.totalorder %s1816_s29, %s1585_s26  ;;  %p1594_p7 = scmp.lt.s32.totalorder %s1585_s26, %s1585_s26 }
  0x3d   : > { %p1588_p3 = pnand %p1586_p2, %p1546_p1  ;;  %p1595_p9 = por %p1594_p7, %p1593_p6 }
  0x3f   : > { %p1589_p5 = pneg %p1588_p3 }
  0x41   : > { %p1596_p12 = pnand %p1595_p9, %p1589_p5 }
  0x43   : > { %1599 = shalt.err (!%p1596_p12)
}
  0x44   : > { %1364 = dma.hbm_to_vmem [thread:$0]  (!%p1812_p13), %s1990_s3, 256, %s1816_s29, [#allocation7], %s1690_s17, %s1690_s17, %s1691_s15  }
  0x45   : > { %p2015_p0 = scmp.ne.s32.totalorder %s2012_s23, 0 }
  0x46   : > { %p2016_p4 = scmp.ne.s32.totalorder (!%p2015_p0), %s2013_s24, 0 }
  0x47   : > { %333 = sbr.rel (%p2015_p0) target bundleno = 1099 (0x44b), region = 56 }
  0x4e   : > { %1653 = dma.done.wait (%p2016_p4), [#allocation4], 256  }
  0x4f   : > { %1655 = vsyncadd (%p2016_p4), [#allocation4], 4294967040 }
  0x50   : > { %1657 = dma.done.wait (%p2016_p4), [#allocation7], 256  }
  0x51   : > { %1659 = vsyncadd (%p2016_p4), [#allocation7], 4294967040  ;;  %s1195_s22 = sshll.u32 %s1678_s12, 3  ;;  %v1428_v0 = vld [vmem:[#allocation3] sm:$0xff]   ;;  %v1429_v1 = vld [vmem:[#allocation3 + $0x8] sm:$0xff]   ;;  %vm438_vm0 = vcmask 261120  }
  0x52   : > { %p375_p1 = scmp.lt.s32.totalorder %s1195_s22, 15  ;;  %1288 = vmatprep.subr.bf16.mxu0 %v1428_v0  ;;  %v1434_v6 = vld [vmem:[#allocation6] sm:$0xff]   ;;  %v1435_v7 = vld [vmem:[#allocation6 + $0x8] sm:$0xff]   ;;  %vm775_vm1 = vcmask 523264   ;;  %vm1693_vm2 = vmmov 0   ;;  %s371_s23 = sand.u32 1, %s1670_s10  }
  0x53   : > { %1289 = vmatpush3.bf16.msra.mxu0 %v1428_v0  ;;  %1300 = vmatprep.subr.bf16.mxu1 %v1434_v6  ;;  %v1197_v8 = vld [vmem:[%s1989_s2] ss:$0 sm:$0xff]  ;;  %s1256_s15 = sshll.u32 %s1678_s12, 4  ;;  %s372_s13 = scalar_lea.vmem [#allocation8], %s371_s23 }
  0x54   : > { %s2029_s22 = smov (!%p375_p1, %s1195_s22), 15  ;;  %1290 = vmatprep.subr.bf16.mxu0 %v1429_v1  ;;  %1301 = vmatpush3.bf16.msra.mxu1 %v1434_v6  ;;  %v1437_v6 = vld [vmem:[%s1992_s5 + $0x8] sm:$0xff]   ;;  %s1101_s16 = sshll.u32 %s372_s13, 4  ;;  %s1942_s16 = int_to_ptr.vmem [resolvable:$true] %s1101_s16 }
  0x55   : > { %s1196_s27 = sshll.u32 %s2029_s22, 2  ;;  %1302 = vmatprep.subr.bf16.mxu1 %v1435_v7  ;;  %s1940_s25 = scalar_lea.hbm %s1996_s9, %s1256_s15 }
  0x56   : > { %s378_s17 = scalar_lea.vmem %s1987_s0, %s1196_s27  ;;  %s1089_s28 = scalar_lea.sflag [#allocation5], %s371_s23 }
  0x57   : > { %v1430_v2 = vld [vmem:[%s378_s17] sm:$0xff]   ;;  %v1431_v3 = vld [vmem:[%s378_s17 + $0x8] sm:$0xff]   ;;  %v1432_v4 = vld [vmem:[%s378_s17 + $0x10] sm:$0xff]   ;;  %1291 = vmatpush3.bf16.msra.mxu0 %v1429_v1  ;;  %s1600_s12 = scalar_lea.vmem %s1942_s16, 16  ;;  %p2017_p8 = scmp.ne.s32.totalorder %s2008_s19, 0 }
  0x58   : > { %1292 = vmatprep.mubr.msk.bf16.mxu0 %vm438_vm0, %v1430_v2  ;;  %v1433_v5 = vld [vmem:[%s378_s17 + $0x18] sm:$0xff]   ;;  %1303 = vmatpush3.bf16.msra.mxu1 %v1435_v7  ;;  %v1438_v7 = vld [vmem:[%s1992_s5 + $0x10] sm:$0xff]   ;;  %p1601_p13 = scmp.ne.s32.totalorder %s1942_s16, %s1600_s12  ;;  %s1694_s26 = smov [#allocation8]  }
  0x59   : > { %s1604_s11 = sshll.u32 %s1694_s26, 4  ;;  %s1605_s11 = int_to_ptr.vmem [resolvable:$false] %s1604_s11 }
  0x5a   : > { %1293 = vmatmul.mubr.msk.bf16.vlgmr.msra.gmra.mrb[0].mxu0 %vm438_vm0, %v1431_v3  ;;  %p1602_p10 = pnand %p1601_p13, %p2017_p8  ;;  %s1606_s21 = scalar_lea.vmem %s1605_s11, 32 }
  0x5b   : > { %1296 = vmatprep.mubr.msk.bf16.mxu0 %vm438_vm0, %v1432_v4  ;;  %p1607_p2 = scmp.lt.s32.totalorder %s1942_s16, %s1605_s11  ;;  %p1608_p3 = scmp.lt.s32.totalorder %s1606_s21, %s1600_s12 }
  0x5c   : > { %p1603_p11 = pneg %p1602_p10 }
  0x5d   : > { %p1609_p5 = por %p1608_p3, %p1607_p2 }
  0x5f   : > { %p1610_p6 = pnand %p1609_p5, %p1603_p11 }
  0x62   : > { %1297 = vmatmul.mubr.msk.bf16.gmra.mrb[4].mxu0 %vm438_vm0, %v1433_v5  ;;  %v1436_v5 = vld [vmem:[%s1992_s5] sm:$0xff]  }
  0x63   : > { %1312 = vmatprep.subr.bf16.mxu0 %v1436_v5 }
  0x64   : > { %1313 = vmatpush3.bf16.msra.mxu0 %v1436_v5 }
  0x65   : > { %1314 = vmatprep.subr.bf16.mxu0 %v1437_v6 }
  0x68   : > { %1315 = vmatpush3.bf16.msra.mxu0 %v1437_v6  ;;  %v1692_v6 = vmov 0.0  }
  0x69   : > { %1316 = vmatprep.subr.bf16.mxu0 %v1438_v7  ;;  %386 = vst [vmem:[#allocation2] sm:$0x1] %v1692_v6  ;;  %1328 = vmatprep.subr.bf16.mxu1 %v1692_v6 }
  0x6c   : > { %1317 = vmatpush3.bf16.msra.mxu0 %v1438_v7  ;;  %v1440_v7 = vld [vmem:[%s1994_s7] sm:$0xff]  }
 0x12d   : > { %v1294_v9 = vpop.f32.mrb[0].mxu0 }
 0x12e   : > { %v494_v10 = vadd.f32 %v1294_v9, %v1197_v8  ;;  %v485_v11 = vpop.f32.mrb[1].mxu0  ;;  %v1216_v9 = vld [vmem:[%s1991_s4] ss:$0 sm:$0xff] }
 0x12f   : > { %v486_v12 = vadd.f32 %v1197_v8, %v485_v11  ;;  %v1295_v13 = vpop.f32.mrb[2].mxu0 }
 0x130   : > { %v1210_v14 = vmul.f32 -1.442695, %v494_v10  ;;  %v497_v15 = vadd.f32 %v1295_v13, %v1197_v8  ;;  %v488_v16 = vpop.f32.mrb[3].mxu0 }
 0x131   : > { %v1208_v17 = vmul.f32 -1.442695, %v486_v12  ;;  %v489_v18 = vadd.f32 %v1197_v8, %v488_v16 }
 0x132   : > { %1448 = vpow2.f32 %v1210_v14  ;;  %v1211_v19 = vmul.f32 -1.442695, %v497_v15 }
 0x133   : > { %1450 = vpow2.f32 %v1208_v17  ;;  %v1209_v20 = vmul.f32 -1.442695, %v489_v18 }
 0x134   : > { %1452 = vpow2.f32 %v1211_v19 }
 0x135   : > { %1454 = vpow2.f32 %v1209_v20  ;;  %v1298_v21 = vpop.f32.mrb[4].mxu0 }
 0x136   : > { %v510_v22 = vadd.f32 %v1298_v21, %v1197_v8  ;;  %v501_v23 = vpop.f32.mrb[5].mxu0 }
 0x137   : > { %v502_v24 = vadd.f32 %v1197_v8, %v501_v23  ;;  %v1299_v25 = vpop.f32.mrb[6].mxu0 }
 0x138   : > { %v1214_v26 = vmul.f32 -1.442695, %v510_v22  ;;  %v513_v27 = vadd.f32 %v1299_v25, %v1197_v8  ;;  %v504_v28 = vpop.f32.mrb[7].mxu0 }
 0x139   : > { %v1212_v29 = vmul.f32 -1.442695, %v502_v24  ;;  %v505_v30 = vadd.f32 %v1197_v8, %v504_v28  ;;  %v1439_v8 = vld [vmem:[%s1992_s5 + $0x18] sm:$0xff]  }
 0x13a   : > { %1456 = vpow2.f32 %v1214_v26  ;;  %v1215_v31 = vmul.f32 -1.442695, %v513_v27  ;;  %1318 = vmatprep.subr.bf16.mxu0 %v1439_v8 }
 0x13b   : > { %1458 = vpow2.f32 %v1212_v29  ;;  %v1213_v32 = vmul.f32 -1.442695, %v505_v30  ;;  %1319 = vmatpush3.bf16.msra.mxu0 %v1439_v8  ;;  %v1441_v8 = vld [vmem:[%s1994_s7 + $0x8] sm:$0xff]  }
 0x13c   : > { %v1449_v33 = vpop.eup %1448  ;;  %1460 = vpow2.f32 %v1215_v31 }
 0x13d   : > { %v1451_v34 = vpop.eup %1450  ;;  %v542_v35 = vadd.f32 1.0, %v1449_v33  ;;  %1462 = vpow2.f32 %v1213_v32 }
 0x13e   : > { %v1453_v36 = vpop.eup %1452  ;;  %v540_v37 = vadd.f32 1.0, %v1451_v34 }
 0x13f   : > { %v1455_v38 = vpop.eup %1454  ;;  %1464 = vrcp.f32 %v542_v35  ;;  %v543_v39 = vadd.f32 1.0, %v1453_v36 }
 0x140   : > { %1466 = vrcp.f32 %v540_v37  ;;  %v541_v40 = vadd.f32 1.0, %v1455_v38 }
 0x141   : > { %1468 = vrcp.f32 %v543_v39 }
 0x142   : > { %1470 = vrcp.f32 %v541_v40 }
 0x144   : > { %v1457_v41 = vpop.eup %1456 }
 0x145   : > { %v1459_v42 = vpop.eup %1458  ;;  %v546_v43 = vadd.f32 1.0, %v1457_v41 }
 0x146   : > { %v1461_v44 = vpop.eup %1460  ;;  %v544_v45 = vadd.f32 1.0, %v1459_v42 }
 0x147   : > { %v1463_v46 = vpop.eup %1462  ;;  %1472 = vrcp.f32 %v546_v43  ;;  %v547_v47 = vadd.f32 1.0, %v1461_v44 }
 0x148   : > { %1474 = vrcp.f32 %v544_v45  ;;  %v545_v48 = vadd.f32 1.0, %v1463_v46 }
 0x149   : > { %v1465_v49 = vpop.eup %1464  ;;  %1476 = vrcp.f32 %v547_v47 }
 0x14a   : > { %v1467_v50 = vpop.eup %1466  ;;  %1478 = vrcp.f32 %v545_v48  ;;  %v566_v53 = vmul.f32 %v1465_v49, %v494_v10 }
 0x14b   : > { %v1469_v51 = vpop.eup %1468  ;;  %v564_v55 = vmul.f32 %v1467_v50, %v486_v12 }
 0x14c   : > { %v1471_v52 = vpop.eup %1470  ;;  %v567_v54 = vmul.f32 %v1469_v51, %v497_v15 }
 0x14d   : > { %v565_v56 = vmul.f32 %v1471_v52, %v489_v18 }
 0x14e   : > { %v573_v57 = vpack.c.bf16 %v567_v54, %v566_v53 }
 0x14f   : > { %v572_v58 = vpack.c.bf16 %v565_v56, %v564_v55 }
 0x151   : > { %v1473_v59 = vpop.eup %1472  ;;  %1304 = vmatprep.mubr.msk.bf16.mxu1 %vm438_vm0, %v572_v58 }
 0x152   : > { %v1475_v60 = vpop.eup %1474  ;;  %1305 = vmatmul.mubr.msk.bf16.vlgmr.msra.gmra.mrb[0].mxu1 %vm438_vm0, %v573_v57  ;;  %v570_v63 = vmul.f32 %v1473_v59, %v510_v22 }
 0x153   : > { %v1477_v61 = vpop.eup %1476  ;;  %v568_v1 = vmul.f32 %v1475_v60, %v502_v24  ;;  %1329 = vmatpush3.bf16.msra.mxu1 %v1440_v7 }
 0x154   : > { %v1479_v62 = vpop.eup %1478  ;;  %v571_v0 = vmul.f32 %v1477_v61, %v513_v27  ;;  %1330 = vmatprep.subr.bf16.mxu1 %v1692_v6 }
 0x155   : > { %v569_v2 = vmul.f32 %v1479_v62, %v505_v30 }
 0x156   : > { %v575_v3 = vpack.c.bf16 %v571_v0, %v570_v63 }
 0x157   : > { %v574_v4 = vpack.c.bf16 %v569_v2, %v568_v1  ;;  %1331 = vmatpush3.bf16.msra.mxu1 %v1441_v8 }
 0x158   : > { %1332 = vmatprep.subr.bf16.mxu1 %v1692_v6 }
 0x159   : > { %1308 = vmatprep.mubr.msk.bf16.mxu1 %vm438_vm0, %v574_v4 }
 0x15a   : > { %1309 = vmatmul.mubr.msk.bf16.gmra.mrb[4].mxu1 %vm438_vm0, %v575_v3 }
 0x15b   : > { %1344 = vmatprep.mubr.msk.bf16.mxu1 %vm1693_vm2, %v1692_v6 }
 0x225   : > { %v1306_v10 = vpop.f32.mrb[0].mxu1 }
 0x226   : > { %v654_v11 = vadd.f32 %v1306_v10, %v1216_v9  ;;  %v645_v12 = vpop.f32.mrb[1].mxu1  ;;  %v1443_v10 = vld [vmem:[%s1994_s7 + $0x18] sm:$0xff]  }
 0x227   : > { %v646_v13 = vadd.f32 %v1216_v9, %v645_v12  ;;  %v1307_v14 = vpop.f32.mrb[2].mxu1  ;;  %v1445_v12 = vld [vmem:[%s1994_s7 + $0x28] sm:$0xff]  }
 0x228   : > { %v1225_v15 = vmul.f32 -1.442695, %v654_v11  ;;  %v657_v16 = vadd.f32 %v1307_v14, %v1216_v9  ;;  %v648_v17 = vpop.f32.mrb[3].mxu1  ;;  %v1447_v14 = vld [vmem:[%s1994_s7 + $0x38] sm:$0xff]  }
 0x229   : > { %v1223_v18 = vmul.f32 -1.442695, %v646_v13  ;;  %v649_v19 = vadd.f32 %v1216_v9, %v648_v17 }
 0x22a   : > { %1480 = vpow2.f32 %v1225_v15  ;;  %v1226_v20 = vmul.f32 -1.442695, %v657_v16  ;;  %v1231_v15 = vld [vmem:[%s1993_s6] ss:$0 sm:$0xff] }
 0x22b   : > { %1482 = vpow2.f32 %v1223_v18  ;;  %v1224_v21 = vmul.f32 -1.442695, %v649_v19 }
 0x22c   : > { %1484 = vpow2.f32 %v1226_v20 }
 0x22d   : > { %1486 = vpow2.f32 %v1224_v21  ;;  %v1310_v22 = vpop.f32.mrb[4].mxu1 }
 0x22e   : > { %v670_v23 = vadd.f32 %v1310_v22, %v1216_v9  ;;  %v661_v24 = vpop.f32.mrb[5].mxu1 }
 0x22f   : > { %v662_v25 = vadd.f32 %v1216_v9, %v661_v24  ;;  %v1311_v26 = vpop.f32.mrb[6].mxu1 }
 0x230   : > { %v1229_v27 = vmul.f32 -1.442695, %v670_v23  ;;  %v673_v28 = vadd.f32 %v1311_v26, %v1216_v9  ;;  %v664_v29 = vpop.f32.mrb[7].mxu1 }
 0x231   : > { %v1227_v30 = vmul.f32 -1.442695, %v662_v25  ;;  %v665_v31 = vadd.f32 %v1216_v9, %v664_v29  ;;  %v1442_v9 = vld [vmem:[%s1994_s7 + $0x10] sm:$0xff]  }
 0x232   : > { %1488 = vpow2.f32 %v1229_v27  ;;  %v1230_v32 = vmul.f32 -1.442695, %v673_v28  ;;  %1333 = vmatpush3.bf16.msra.mxu1 %v1442_v9 }
 0x233   : > { %1490 = vpow2.f32 %v1227_v30  ;;  %v1228_v33 = vmul.f32 -1.442695, %v665_v31  ;;  %1334 = vmatprep.subr.bf16.mxu1 %v1692_v6 }
 0x234   : > { %v1481_v34 = vpop.eup %1480  ;;  %1492 = vpow2.f32 %v1230_v32 }
 0x235   : > { %v1483_v35 = vpop.eup %1482  ;;  %v702_v36 = vadd.f32 1.0, %v1481_v34  ;;  %1494 = vpow2.f32 %v1228_v33 }
 0x236   : > { %v1485_v37 = vpop.eup %1484  ;;  %v700_v38 = vadd.f32 1.0, %v1483_v35  ;;  %1335 = vmatpush3.bf16.msra.mxu1 %v1443_v10 }
 0x237   : > { %v1487_v39 = vpop.eup %1486  ;;  %1496 = vrcp.f32 %v702_v36  ;;  %v703_v40 = vadd.f32 1.0, %v1485_v37  ;;  %1336 = vmatprep.subr.bf16.mxu1 %v1692_v6 }
 0x238   : > { %1498 = vrcp.f32 %v700_v38  ;;  %v701_v41 = vadd.f32 1.0, %v1487_v39 }
 0x239   : > { %1500 = vrcp.f32 %v703_v40 }
 0x23a   : > { %1502 = vrcp.f32 %v701_v41 }
 0x23c   : > { %v1489_v42 = vpop.eup %1488 }
 0x23d   : > { %v1491_v43 = vpop.eup %1490  ;;  %v706_v44 = vadd.f32 1.0, %v1489_v42 }
 0x23e   : > { %v1493_v45 = vpop.eup %1492  ;;  %v704_v46 = vadd.f32 1.0, %v1491_v43 }
 0x23f   : > { %v1495_v47 = vpop.eup %1494  ;;  %1504 = vrcp.f32 %v706_v44  ;;  %v707_v48 = vadd.f32 1.0, %v1493_v45 }
 0x240   : > { %1506 = vrcp.f32 %v704_v46  ;;  %v705_v49 = vadd.f32 1.0, %v1495_v47 }
 0x241   : > { %v1497_v50 = vpop.eup %1496  ;;  %1508 = vrcp.f32 %v707_v48 }
 0x242   : > { %v1499_v51 = vpop.eup %1498  ;;  %1510 = vrcp.f32 %v705_v49  ;;  %v726_v54 = vmul.f32 %v1497_v50, %v654_v11  ;;  %v1444_v11 = vld [vmem:[%s1994_s7 + $0x20] sm:$0xff]  }
 0x243   : > { %v1501_v52 = vpop.eup %1500  ;;  %v724_v56 = vmul.f32 %v1499_v51, %v646_v13  ;;  %1337 = vmatpush3.bf16.msra.mxu1 %v1444_v11  ;;  %v1446_v13 = vld [vmem:[%s1994_s7 + $0x30] sm:$0xff]  }
 0x244   : > { %v1503_v53 = vpop.eup %1502  ;;  %v727_v55 = vmul.f32 %v1501_v52, %v657_v16  ;;  %1338 = vmatprep.subr.bf16.mxu1 %v1692_v6 }
 0x245   : > { %v725_v57 = vmul.f32 %v1503_v53, %v649_v19 }
 0x246   : > { %v733_v58 = vpack.c.bf16 %v727_v55, %v726_v54 }
 0x247   : > { %v732_v59 = vpack.c.bf16 %v725_v57, %v724_v56  ;;  %1339 = vmatpush3.bf16.msra.mxu1 %v1445_v12 }
 0x248   : > { %1340 = vmatprep.subr.bf16.mxu1 %v1692_v6 }
 0x249   : > { %v1505_v60 = vpop.eup %1504  ;;  %1320 = vmatprep.mubr.msk.bf16.mxu0 %vm775_vm1, %v732_v59 }
 0x24a   : > { %v1507_v61 = vpop.eup %1506  ;;  %1321 = vmatmul.mubr.msk.bf16.vlgmr.msra.gmra.mrb[8].mxu0 %vm775_vm1, %v733_v58  ;;  %v730_v0 = vmul.f32 %v1505_v60, %v670_v23 }
 0x24b   : > { %v1509_v62 = vpop.eup %1508  ;;  %v728_v2 = vmul.f32 %v1507_v61, %v662_v25  ;;  %1341 = vmatpush3.bf16.msra.mxu1 %v1446_v13 }
 0x24c   : > { %v1511_v63 = vpop.eup %1510  ;;  %v731_v1 = vmul.f32 %v1509_v62, %v673_v28  ;;  %1342 = vmatprep.subr.bf16.mxu1 %v1692_v6 }
 0x24d   : > { %v729_v3 = vmul.f32 %v1511_v63, %v665_v31 }
 0x24e   : > { %v735_v4 = vpack.c.bf16 %v731_v1, %v730_v0 }
 0x24f   : > { %v734_v5 = vpack.c.bf16 %v729_v3, %v728_v2  ;;  %1343 = vmatpush3.bf16.msra.mxu1 %v1447_v14 }
 0x251   : > { %1324 = vmatprep.mubr.msk.bf16.mxu0 %vm775_vm1, %v734_v5 }
 0x252   : > { %1325 = vmatmul.mubr.msk.bf16.gmra.mrb[12].mxu0 %vm775_vm1, %v735_v4 }
 0x31d   : > { %v1322_v16 = vpop.f32.mrb[8].mxu0 }
 0x31e   : > { %v831_v17 = vadd.f32 %v1322_v16, %v1231_v15  ;;  %v822_v18 = vpop.f32.mrb[9].mxu0 }
 0x31f   : > { %v823_v19 = vadd.f32 %v1231_v15, %v822_v18  ;;  %v1323_v20 = vpop.f32.mrb[10].mxu0 }
 0x320   : > { %v1242_v21 = vmul.f32 -1.442695, %v831_v17  ;;  %v834_v22 = vadd.f32 %v1323_v20, %v1231_v15  ;;  %v825_v23 = vpop.f32.mrb[11].mxu0  ;;  %v960_v20 = vld [vmem:[#allocation2] sm:$0x1] }
 0x321   : > { %v1240_v24 = vmul.f32 -1.442695, %v823_v19  ;;  %v826_v25 = vadd.f32 %v1231_v15, %v825_v23 }
 0x322   : > { %1512 = vpow2.f32 %v1242_v21  ;;  %v1243_v26 = vmul.f32 -1.442695, %v834_v22 }
 0x323   : > { %1514 = vpow2.f32 %v1240_v24  ;;  %v1241_v27 = vmul.f32 -1.442695, %v826_v25 }
 0x324   : > { %1516 = vpow2.f32 %v1243_v26  ;;  %v998_v26 = vld [vmem:[%s1995_s8] sm:$0x1] }
 0x325   : > { %1518 = vpow2.f32 %v1241_v27  ;;  %v1326_v28 = vpop.f32.mrb[12].mxu0 }
 0x326   : > { %v847_v29 = vadd.f32 %v1326_v28, %v1231_v15  ;;  %v838_v30 = vpop.f32.mrb[13].mxu0 }
 0x327   : > { %v839_v31 = vadd.f32 %v1231_v15, %v838_v30  ;;  %v1327_v32 = vpop.f32.mrb[14].mxu0 }
 0x328   : > { %v1246_v33 = vmul.f32 -1.442695, %v847_v29  ;;  %v850_v34 = vadd.f32 %v1327_v32, %v1231_v15  ;;  %v841_v35 = vpop.f32.mrb[15].mxu0 }
 0x329   : > { %v1244_v36 = vmul.f32 -1.442695, %v839_v31  ;;  %v842_v37 = vadd.f32 %v1231_v15, %v841_v35 }
 0x32a   : > { %1520 = vpow2.f32 %v1246_v33  ;;  %v1247_v38 = vmul.f32 -1.442695, %v850_v34 }
 0x32b   : > { %1522 = vpow2.f32 %v1244_v36  ;;  %v1245_v39 = vmul.f32 -1.442695, %v842_v37 }
 0x32c   : > { %v1513_v40 = vpop.eup %1512  ;;  %1524 = vpow2.f32 %v1247_v38 }
 0x32d   : > { %v1515_v41 = vpop.eup %1514  ;;  %v879_v42 = vadd.f32 1.0, %v1513_v40  ;;  %1526 = vpow2.f32 %v1245_v39 }
 0x32e   : > { %v1517_v43 = vpop.eup %1516  ;;  %v877_v44 = vadd.f32 1.0, %v1515_v41 }
 0x32f   : > { %v1519_v45 = vpop.eup %1518  ;;  %v880_v46 = vadd.f32 1.0, %v1517_v43 }
 0x330   : > { %1528 = vrcp.f32 %v877_v44  ;;  %v878_v47 = vadd.f32 1.0, %v1519_v45 }
 0x331   : > { %1530 = vrcp.f32 %v879_v42 }
 0x332   : > { %1532 = vrcp.f32 %v878_v47 }
 0x333   : > { %1534 = vrcp.f32 %v880_v46 }
 0x334   : > { %v1521_v48 = vpop.eup %1520 }
 0x335   : > { %v1523_v49 = vpop.eup %1522  ;;  %v883_v50 = vadd.f32 1.0, %v1521_v48 }
 0x336   : > { %v1525_v51 = vpop.eup %1524  ;;  %v881_v52 = vadd.f32 1.0, %v1523_v49 }
 0x337   : > { %v1527_v53 = vpop.eup %1526  ;;  %v884_v54 = vadd.f32 1.0, %v1525_v51 }
 0x338   : > { %1536 = vrcp.f32 %v881_v52  ;;  %v882_v55 = vadd.f32 1.0, %v1527_v53 }
 0x339   : > { %1538 = vrcp.f32 %v883_v50 }
 0x33a   : > { %v1529_v56 = vpop.eup %1528  ;;  %1540 = vrcp.f32 %v882_v55 }
 0x33b   : > { %v1531_v57 = vpop.eup %1530  ;;  %1542 = vrcp.f32 %v884_v54  ;;  %v901_v59 = vmul.f32 %v1529_v56, %v823_v19 }
 0x33c   : > { %v1533_v58 = vpop.eup %1532  ;;  %v903_v62 = vmul.f32 %v1531_v57, %v831_v17 }
 0x33d   : > { %v902_v60 = vmul.f32 %v1533_v58, %v826_v25  ;;  %v1535_v61 = vpop.eup %1534 }
 0x33e   : > { %v904_v0 = vmul.f32 %v1535_v61, %v834_v22 }
 0x33f   : > { %v961_v63 = vadd.f32 %v902_v60, %v901_v59 }
 0x341   : > { %v962_v1 = vadd.f32 %v961_v63, %v903_v62 }
 0x342   : > { %v1537_v2 = vpop.eup %1536 }
 0x343   : > { %v1539_v3 = vpop.eup %1538  ;;  %v905_v4 = vmul.f32 %v1537_v2, %v839_v31  ;;  %v963_v5 = vadd.f32 %v962_v1, %v904_v0 }
 0x344   : > { %v1541_v6 = vpop.eup %1540  ;;  %v907_v10 = vmul.f32 %v1539_v3, %v847_v29 }
 0x345   : > { %v964_v7 = vadd.f32 %v963_v5, %v905_v4  ;;  %v906_v8 = vmul.f32 %v1541_v6, %v842_v37  ;;  %v1543_v9 = vpop.eup %1542 }
 0x346   : > { %v908_v12 = vmul.f32 %v1543_v9, %v850_v34 }
 0x347   : > { %v965_v11 = vadd.f32 %v964_v7, %v906_v8 }
 0x349   : > { %v966_v13 = vadd.f32 %v965_v11, %v907_v10 }
 0x34b   : > { %v967_v14 = vadd.f32 %v966_v13, %v908_v12 }
 0x34d   : > { %v968_v15 = vrot.slane %v967_v14, 4 }
 0x34f   : > { %v969_v16 = vadd.f32 %v968_v15, %v967_v14 }
 0x351   : > { %v970_v17 = vrot.slane %v969_v16, 2 }
 0x353   : > { %v971_v18 = vadd.f32 %v970_v17, %v969_v16 }
 0x355   : > { %v972_v19 = vrot.slane %v971_v18, 1 }
 0x357   : > { %v973_v21 = vadd.f32 %v972_v19, %v971_v18 }
 0x359   : > { %v974_v22 = vadd.f32 %v973_v21, %v960_v20 }
 0x35b   : > { %975 = vst [vmem:[#allocation2] sm:$0x1] %v974_v22 }
 0x362   : > { %v979_v23 = vld [vmem:[#allocation2] sm:$0x1] }
 0x363   : > { %v980_v24 = vmul.f32 0.015625, %v979_v23 }
 0x365   : > { %v981_v25 = vpack.c.bf16 %v980_v24, %v980_v24 }
 0x367   : > { %1345 = vmatmul.mubr.bf16.vlgmr.msra.gmra.mrb[8].mxu1 %v981_v25 }
 0x43a   : > { %v1081_v27 = vpop.f32.mrb[8].mxu1 }
 0x43b   : > { %v1082_v28 = vadd.f32 %v1081_v27, %v998_v26  ;;  %v1346_v29 = vpop.f32.mrb[9].mxu1 }
 0x43c   : > { %v1084_v30 = vpop.f32.mrb[10].mxu1 }
 0x43d   : > { %1087 = vst [vmem:[%s372_s13] sm:$0x1] %v1082_v28  ;;  %v1347_v31 = vpop.f32.mrb[11].mxu1 }
 0x43e   : > { %1613 = shalt.err (!%p1610_p6)
}
 0x43f   : > { %s1614_s22 = scalar_lea.hbm %s1940_s25, 16  ;;  %s1618_s23 = scalar_lea.hbm %s1996_s9, 32 }
 0x440   : > { %p1615_p7 = scmp.ne.s32.totalorder %s1940_s25, %s1614_s22  ;;  %p1619_p0 = scmp.lt.u32.totalorder %s1940_s25, %s1996_s9 }
 0x441   : > { %p1620_p4 = scmp.lt.u32.totalorder %s1618_s23, %s1614_s22  ;;  %p1622_p13 = scmp.lt.u32.totalorder %s1614_s22, %s1940_s25 }
 0x442   : > { %p1616_p9 = pnand %p1615_p7, %p2017_p8 }
 0x443   : > { %p1621_p1 = por %p1620_p4, %p1619_p0 }
 0x444   : > { %p1617_p12 = pneg %p1616_p9 }
 0x445   : > { %p1623_p10 = por %p1622_p13, %p1621_p1 }
 0x447   : > { %p1624_p11 = pnand %p1623_p10, %p1617_p12 }
 0x449   : > { %1627 = shalt.err (!%p1624_p11)
}
 0x44a   : > { %1356 = dma.vmem_to_hbm [thread:$0]  (%p2017_p8), %s1942_s16, 16, %s1940_s25, %s1089_s28  }
 0x44b PF: > { %s2018_s15 = sld [smem:[#allocation15_spill]]  ;;  %p1373_p2 = scmp.ge.s32.totalorder %s1686_s14, 2 }
 0x44c   : > { %s1113_s13 = sand.u32 1, %s1666_s30  }
 0x44d   : > { %s1114_s18 = scalar_lea.sflag [#allocation5], %s1113_s13 }
 0x451   : > { %p2019_p3 = scmp.ne.s32.totalorder %s2018_s15, 0 }
 0x453   : > { %p1366_p5 = pnand %p1373_p2, %p2019_p3 }
 0x455   : > { %1661 = dma.done.wait (!%p1366_p5), %s1114_s18, 16  }
 0x456   : > { %1663 = vsyncadd (!%p1366_p5), %s1114_s18, 4294967280  ;;  %s24_s14 = sadd.s32 1, %s1686_s14   ;;  %s2020_s20 = sld [smem:[#allocation12_spill]] }
 0x457   : > { %p21_p6 = scmp.ge.s32.totalorder %s24_s14, 4   ;;  %s2021_s11 = sld [smem:[#allocation16_spill]] }
 0x458   : > { %s2022_s12 = sld [smem:[#allocation13_spill]]  ;;  %s2023_s13 = sld [smem:[#allocation14_spill]] }
 0x459   : > { %s2024_s30 = smov %s1670_s10  ;;  %23 = sbr.rel (!%p21_p6) target bundleno = 6 (0x6), region = 108 }
 0x45c   : > { %s2025_s10 = smov %s2020_s20 }
 0x460   :  { %1118 = vsyncpa [#allocation4], 1 }
 0x461   :  { %1120 = vsyncpa [#allocation4 + $0x1], 1 }
 0x462   :  { %1121 = vsyncpa [#allocation7], 1 }
 0x463   :  { %1122 = vsyncpa [#allocation5], 1 }
 0x464   :  { %1124 = vsyncpa [#allocation5 + $0x1], 1 }

</bundles_post_ra>
